<compile_context>
chip_gen: v6e
topology: v6e:2x2x1
jax: 0.10.0
libtpu: 0.0.40
codegen_flags: <defaults>
</compile_context>

<pallas_src>
import jax
import jax.numpy as jnp
from jax.experimental import pallas as pl
from jax.experimental.pallas import tpu as pltpu


OUT_W = 8  # output slab columns: [a(2) | y0(2) | y1(2) | eps(1) | pad(1)]


def _round_up(n, m):
    return ((n + m - 1) // m) * m


def _cdiv(a, b):
    return -(-a // b)


# --------------------------------------------------------------------------
# Kernel
# --------------------------------------------------------------------------
def dragonnet_kernel(
    x_ref,                      # (TB, D)    float32 (cast to compute dtype here)
    w1_ref, b1_ref,             # (D, H)     / (1, H)
    w2_ref, b2_ref,             # (H, H)     / (1, H)
    wh1_ref, bh1_ref,           # (H, 3H)    / (1, 3H)   [y0w1 | y1w1 | I]
    wh2_ref, bh2_ref,           # (3H, 3H)   / (1, 3H)   block-diag(y0w2, y1w2, I)
    w3_ref,                     # (3H, 8)    fused y0/y1/propensity projections
    bout_ref,                   # (1, 8)     [ba | y0b3 | y1b3 | epsw | 0]
    out_ref,                    # (TB, 8)    [a | y0 | y1 | eps | pad]
):
    cdt = w1_ref.dtype          # compute dtype comes from the packed weights
    f32 = jnp.float32

    # In-kernel cast: x arrives f32 from HBM (no separate XLA cast pass).
    x = x_ref[...].astype(cdt)

    # Shared trunk (ReLU / accumulation in f32; re-cast activations to the
    # compute dtype only at matmul inputs).
    h = jnp.maximum(
        jnp.dot(x, w1_ref[...], preferred_element_type=f32) + b1_ref[...], 0.0)
    z = jnp.maximum(
        jnp.dot(h.astype(cdt), w2_ref[...], preferred_element_type=f32)
        + b2_ref[...], 0.0)

    # Fused head pipeline.  The trailing H columns of g1/g2 carry z unchanged
    # through identity blocks (ReLU is identity since z >= 0, biases are 0),
    # so the propensity head needs no separate matmul.
    g1 = jnp.maximum(
        jnp.dot(z.astype(cdt), wh1_ref[...], preferred_element_type=f32)
        + bh1_ref[...], 0.0)
    g2 = jnp.maximum(
        jnp.dot(g1.astype(cdt), wh2_ref[...], preferred_element_type=f32)
        + bh2_ref[...], 0.0)

    # Single lane-packed output slab: y0/y1 final layers, the propensity head
    # (via the carried z slice), and eps (a pure bias column) in one store.
    out = jnp.dot(g2.astype(cdt), w3_ref[...], preferred_element_type=f32) \
        + bout_ref[...]
    out_ref[...] = out.astype(out_ref.dtype)


# --------------------------------------------------------------------------
# Parameter packing (runs once in plain JAX, outside the kernel)
# --------------------------------------------------------------------------
def pack_params(params, compute_dtype):
    f32 = jnp.float32
    cdt = compute_dtype
    H = params["w2"].shape[0]
    zeros = lambda s: jnp.zeros(s, f32)
    eye = jnp.eye(H, dtype=f32)   # 1.0 / 0.0 are exact in bf16 -> exact carry

    # Head layer 1: [y0w1 | y1w1 | I]  -> (H, 3H); identity bias cols MUST be 0.
    wh1 = jnp.concatenate([params["y0w1"], params["y1w1"], eye], axis=1)
    bh1 = jnp.concatenate([params["y0b1"], params["y1b1"], zeros((1, H))], axis=1)

    # Head layer 2: block-diag(y0w2, y1w2, I) -> (3H, 3H).
    wh2 = jnp.concatenate([
        jnp.concatenate([params["y0w2"], zeros((H, H)), zeros((H, H))], axis=1),
        jnp.concatenate([zeros((H, H)), params["y1w2"], zeros((H, H))], axis=1),
        jnp.concatenate([zeros((H, H)), zeros((H, H)), eye], axis=1),
    ], axis=0)
    bh2 = jnp.concatenate([params["y0b2"], params["y1b2"], zeros((1, H))], axis=1)

    # Final fused projection into the 8-wide slab:
    #   cols 0:2 = a_out (from the carried z rows), 2:4 = y0_out, 4:6 = y1_out,
    #   col 6 = eps (bias only), col 7 = pad.
    w3 = jnp.concatenate([
        jnp.concatenate([zeros((H, 2)), params["y0w3"], zeros((H, 4))], axis=1),
        jnp.concatenate([zeros((H, 4)), params["y1w3"], zeros((H, 2))], axis=1),
        jnp.concatenate([params["wa"], zeros((H, 6))], axis=1),
    ], axis=0)                                                    # (3H, 8)
    bout = jnp.concatenate(
        [params["ba"], params["y0b3"], params["y1b3"],
         params["epsw"], zeros((1, 1))], axis=1)                  # (1, 8)

    return dict(
        w1=params["w1"].astype(cdt), b1=params["b1"].astype(f32),
        w2=params["w2"].astype(cdt), b2=params["b2"].astype(f32),
        wh1=wh1.astype(cdt), bh1=bh1.astype(f32),
        wh2=wh2.astype(cdt), bh2=bh2.astype(f32),
        w3=w3.astype(cdt), bout=bout.astype(f32),
    )


# --------------------------------------------------------------------------
# Wrapper
# --------------------------------------------------------------------------
def _select_batch_tile(B, block_b, sublane_pack, min_grid_steps=2):
    """Batch tile: sublane-pack aligned, capped by block_b, and small enough
    that the grid has >= min_grid_steps steps when B allows it (so the
    'parallel' axis shards across both TensorCores on v7x)."""
    cap = max(_round_up(block_b, sublane_pack), sublane_pack)
    tb = _round_up(max(_cdiv(B, min_grid_steps), 1), sublane_pack)
    return max(sublane_pack, min(tb, cap))


def dragonnet_forward(x, params, *, compute_dtype=jnp.bfloat16, block_b=8192,
                      vmem_limit_bytes=32 * 1024 * 1024, return_slab=False):
    """DragonNet forward pass as one batch-gridded Pallas call.

    x: (B, D) float32.  params: dict of (in,out)-layout weights / (1,out) biases.
    Returns (a_out (B,2), y0_out (B,2), y1_out (B,2), eps (B,1)), all float32,
    or the packed (B, 8) slab if return_slab=True.
    Note: with compute_dtype=bf16, outputs differ from a pure-f32 module at the
    ~1e-2 level (x/weights quantized before each matmul) — expected.
    """
    B, D = x.shape
    packed = pack_params(params, compute_dtype)

    itemsize = jnp.dtype(compute_dtype).itemsize
    sublane_pack = {1: 32, 2: 16}.get(itemsize, 8)

    TB = _select_batch_tile(B, block_b, sublane_pack)
    Bp = _round_up(B, TB)
    # x stays float32; the cast to compute_dtype happens inside the kernel.
    xp = x if Bp == B else jnp.pad(x, ((0, Bp - B), (0, 0)))

    grid = (Bp // TB,)

    weight_order = ("w1", "b1", "w2", "b2", "wh1", "bh1", "wh2", "bh2",
                    "w3", "bout")
    weights = tuple(packed[k] for k in weight_order)

    # x / out move with the grid; weights use a constant index_map so they are
    # fetched once and stay resident in VMEM across all grid steps.
    in_specs = [pl.BlockSpec((TB, D), lambda i: (i, 0))] + [
        pl.BlockSpec(w.shape, lambda i: (0, 0)) for w in weights
    ]
    out_spec = pl.BlockSpec((TB, OUT_W), lambda i: (i, 0))

    slab = pl.pallas_call(
        dragonnet_kernel,
        out_shape=jax.ShapeDtypeStruct((Bp, OUT_W), jnp.float32),
        grid=grid,
        in_specs=in_specs,
        out_specs=out_spec,
        compiler_params=pltpu.CompilerParams(
            dimension_semantics=("parallel",),
            vmem_limit_bytes=vmem_limit_bytes,
        ),
    )(xp, *weights)

    if return_slab:
        return slab[:B]
    # Combined row-trim + column split (one slice per output).
    a_out = slab[:B, 0:2]
    y0_out = slab[:B, 2:4]
    y1_out = slab[:B, 4:6]
    eps = slab[:B, 6:7]
    return a_out, y0_out, y1_out, eps


# --------------------------------------------------------------------------
# Synthetic parameters + pure-JAX reference
# --------------------------------------------------------------------------
def init_params(key, input_size, hidden):
    """Deterministic synthetic parameters (matches the module's layer shapes)."""
    def lin(key, fan_in, fan_out):
        kw, kb = jax.random.split(key)
        w = jax.random.normal(kw, (fan_in, fan_out), jnp.float32) / jnp.sqrt(fan_in)
        b = jax.random.normal(kb, (1, fan_out), jnp.float32) * 0.1
        return w, b

    keys = jax.random.split(key, 10)
    p = {}
    # Trunk: Linear(D,H), ReLU, Linear(H,H), ReLU, Linear(H,2)
    p["w1"], p["b1"] = lin(keys[0], input_size, hidden)
    p["w2"], p["b2"] = lin(keys[1], hidden, hidden)
    p["wa"], p["ba"] = lin(keys[2], hidden, 2)
    # y0 head: SimpleMLP(hidden)
    p["y0w1"], p["y0b1"] = lin(keys[3], hidden, hidden)
    p["y0w2"], p["y0b2"] = lin(keys[4], hidden, hidden)
    p["y0w3"], p["y0b3"] = lin(keys[5], hidden, 2)
    # y1 head
    p["y1w1"], p["y1b1"] = lin(keys[6], hidden, hidden)
    p["y1w2"], p["y1b2"] = lin(keys[7], hidden, hidden)
    p["y1w3"], p["y1b3"] = lin(keys[8], hidden, 2)
    # epsilon: Linear(1, 1, bias=False)
    p["epsw"] = jax.random.normal(keys[9], (1, 1), jnp.float32)
    return p


def dragonnet_ref(x, p, compute_dtype=jnp.float32):
    """Pure-JAX reference mirroring the kernel's dtype policy."""
    f32 = jnp.float32
    cdt = compute_dtype

    def lin(a, w, b):
        return jnp.dot(a.astype(cdt), w.astype(cdt),
                       preferred_element_type=f32) + b

    relu = lambda v: jnp.maximum(v, 0.0)
    h = relu(lin(x, p["w1"], p["b1"]))
    z = relu(lin(h, p["w2"], p["b2"]))
    a_out = lin(z, p["wa"], p["ba"])
    h0 = relu(lin(relu(lin(z, p["y0w1"], p["y0b1"])), p["y0w2"], p["y0b2"]))
    y0 = lin(h0, p["y0w3"], p["y0b3"])
    h1 = relu(lin(relu(lin(z, p["y1w1"], p["y1b1"])), p["y1w2"], p["y1b2"]))
    y1 = lin(h1, p["y1w3"], p["y1b3"])
    eps = jnp.ones((x.shape[0], 1), f32) * p["epsw"]
    return a_out, y0, y1, eps


if __name__ == "__main__":
    B, D, H = 8, 16, 32   # batch, input_size, hidden (hidden_sizes=[32, 32])
    key = jax.random.PRNGKey(0)
    kx, kp = jax.random.split(key)
    x = jax.random.normal(kx, (B, D), jnp.float32)
    params = init_params(kp, D, H)

    # 1) Exact check in f32 against the plain reference (validates the
    #    identity z pass-through / fused projection packing).
    outs_f32 = jax.block_until_ready(
        dragonnet_forward(x, params, compute_dtype=jnp.float32))
    refs_f32 = dragonnet_ref(x, params, compute_dtype=jnp.float32)
    for o, r in zip(outs_f32, refs_f32):
        assert o.shape == r.shape and o.dtype == r.dtype
        assert jnp.allclose(o, r, atol=1e-4, rtol=1e-4), (o, r)

    # 2) Performance path: f32 x cast in-kernel, bf16 weights/matmuls,
    #    f32 accumulation & biases.
    outs_bf16 = jax.block_until_ready(
        dragonnet_forward(x, params, compute_dtype=jnp.bfloat16))
    refs_bf16 = dragonnet_ref(x, params, compute_dtype=jnp.bfloat16)
    for o, r in zip(outs_bf16, refs_bf16):
        assert o.shape == r.shape and o.dtype == r.dtype
        assert jnp.allclose(o, r, atol=2e-2, rtol=2e-2), (o, r)

    print("KERNEL_OK")
</pallas_src>

<mosaic_0001>
module attributes {stable_mosaic.version = 11 : i64} {
  func.func @dragonnet_kernel(%arg0: i32, %arg1: memref<8x16xf32, #tpu.memory_space<vmem>>, %arg2: memref<16x32xf32, #tpu.memory_space<vmem>>, %arg3: memref<1x32xf32, #tpu.memory_space<vmem>>, %arg4: memref<32x32xf32, #tpu.memory_space<vmem>>, %arg5: memref<1x32xf32, #tpu.memory_space<vmem>>, %arg6: memref<32x96xf32, #tpu.memory_space<vmem>>, %arg7: memref<1x96xf32, #tpu.memory_space<vmem>>, %arg8: memref<96x96xf32, #tpu.memory_space<vmem>>, %arg9: memref<1x96xf32, #tpu.memory_space<vmem>>, %arg10: memref<96x8xf32, #tpu.memory_space<vmem>>, %arg11: memref<1x8xf32, #tpu.memory_space<vmem>>, %arg12: memref<8x8xf32, #tpu.memory_space<vmem>>) attributes {dimension_semantics = [#tpu.dimension_semantics<parallel>], iteration_bounds = array<i64: 1>, scalar_prefetch = 0 : i64, scratch_operands = 0 : i64, tpu.core_type = #tpu.core_type<tc>, window_params = [{transform_indices = @transform_0, window_bounds = array<i64: 8, 16>}, {pipeline_mode = #tpu.pipeline_mode<synchronous>, transform_indices = @transform_1, window_bounds = array<i64: 16, 32>}, {pipeline_mode = #tpu.pipeline_mode<synchronous>, transform_indices = @transform_2, window_bounds = array<i64: 1, 32>}, {pipeline_mode = #tpu.pipeline_mode<synchronous>, transform_indices = @transform_3, window_bounds = array<i64: 32, 32>}, {pipeline_mode = #tpu.pipeline_mode<synchronous>, transform_indices = @transform_4, window_bounds = array<i64: 1, 32>}, {pipeline_mode = #tpu.pipeline_mode<synchronous>, transform_indices = @transform_5, window_bounds = array<i64: 32, 96>}, {pipeline_mode = #tpu.pipeline_mode<synchronous>, transform_indices = @transform_6, window_bounds = array<i64: 1, 96>}, {pipeline_mode = #tpu.pipeline_mode<synchronous>, transform_indices = @transform_7, window_bounds = array<i64: 96, 96>}, {pipeline_mode = #tpu.pipeline_mode<synchronous>, transform_indices = @transform_8, window_bounds = array<i64: 1, 96>}, {pipeline_mode = #tpu.pipeline_mode<synchronous>, transform_indices = @transform_9, window_bounds = array<i64: 96, 8>}, {pipeline_mode = #tpu.pipeline_mode<synchronous>, transform_indices = @transform_10, window_bounds = array<i64: 1, 8>}, {transform_indices = @transform_11, window_bounds = array<i64: 8, 8>}]} {
    %c0 = arith.constant 0 : index
    %c0_0 = arith.constant 0 : index
    %0 = vector.load %arg1[%c0, %c0_0] : memref<8x16xf32, #tpu.memory_space<vmem>>, vector<8x16xf32>
    %c0_1 = arith.constant 0 : index
    %c0_2 = arith.constant 0 : index
    %1 = vector.load %arg2[%c0_1, %c0_2] : memref<16x32xf32, #tpu.memory_space<vmem>>, vector<16x32xf32>
    %cst = arith.constant dense<0.000000e+00> : vector<8x32xf32>
    %2 = tpu.matmul %0, %1, %cst {dimension_numbers = #tpu.dot_dimension_numbers<[1], [0], [0], [1], [0, 0, 1, 1], [], []>} : vector<8x16xf32>, vector<16x32xf32>, vector<8x32xf32> -> vector<8x32xf32>
    %c0_3 = arith.constant 0 : index
    %c0_4 = arith.constant 0 : index
    %3 = vector.load %arg3[%c0_3, %c0_4] : memref<1x32xf32, #tpu.memory_space<vmem>>, vector<1x32xf32>
    %4 = vector.broadcast %3 : vector<1x32xf32> to vector<8x32xf32>
    %5 = arith.addf %2, %4 : vector<8x32xf32>
    %cst_5 = arith.constant 0.000000e+00 : f32
    %6 = vector.broadcast %cst_5 : f32 to vector<8x32xf32>
    %7 = arith.maximumf %5, %6 : vector<8x32xf32>
    %c0_6 = arith.constant 0 : index
    %c0_7 = arith.constant 0 : index
    %8 = vector.load %arg4[%c0_6, %c0_7] : memref<32x32xf32, #tpu.memory_space<vmem>>, vector<32x32xf32>
    %cst_8 = arith.constant dense<0.000000e+00> : vector<8x32xf32>
    %9 = tpu.matmul %7, %8, %cst_8 {dimension_numbers = #tpu.dot_dimension_numbers<[1], [0], [0], [1], [0, 0, 1, 1], [], []>} : vector<8x32xf32>, vector<32x32xf32>, vector<8x32xf32> -> vector<8x32xf32>
    %c0_9 = arith.constant 0 : index
    %c0_10 = arith.constant 0 : index
    %10 = vector.load %arg5[%c0_9, %c0_10] : memref<1x32xf32, #tpu.memory_space<vmem>>, vector<1x32xf32>
    %11 = vector.broadcast %10 : vector<1x32xf32> to vector<8x32xf32>
    %12 = arith.addf %9, %11 : vector<8x32xf32>
    %cst_11 = arith.constant 0.000000e+00 : f32
    %13 = vector.broadcast %cst_11 : f32 to vector<8x32xf32>
    %14 = arith.maximumf %12, %13 : vector<8x32xf32>
    %c0_12 = arith.constant 0 : index
    %c0_13 = arith.constant 0 : index
    %15 = vector.load %arg6[%c0_12, %c0_13] : memref<32x96xf32, #tpu.memory_space<vmem>>, vector<32x96xf32>
    %cst_14 = arith.constant dense<0.000000e+00> : vector<8x96xf32>
    %16 = tpu.matmul %14, %15, %cst_14 {dimension_numbers = #tpu.dot_dimension_numbers<[1], [0], [0], [1], [0, 0, 1, 1], [], []>} : vector<8x32xf32>, vector<32x96xf32>, vector<8x96xf32> -> vector<8x96xf32>
    %c0_15 = arith.constant 0 : index
    %c0_16 = arith.constant 0 : index
    %17 = vector.load %arg7[%c0_15, %c0_16] : memref<1x96xf32, #tpu.memory_space<vmem>>, vector<1x96xf32>
    %18 = vector.broadcast %17 : vector<1x96xf32> to vector<8x96xf32>
    %19 = arith.addf %16, %18 : vector<8x96xf32>
    %cst_17 = arith.constant 0.000000e+00 : f32
    %20 = vector.broadcast %cst_17 : f32 to vector<8x96xf32>
    %21 = arith.maximumf %19, %20 : vector<8x96xf32>
    %c0_18 = arith.constant 0 : index
    %c0_19 = arith.constant 0 : index
    %22 = vector.load %arg8[%c0_18, %c0_19] : memref<96x96xf32, #tpu.memory_space<vmem>>, vector<96x96xf32>
    %cst_20 = arith.constant dense<0.000000e+00> : vector<8x96xf32>
    %23 = tpu.matmul %21, %22, %cst_20 {dimension_numbers = #tpu.dot_dimension_numbers<[1], [0], [0], [1], [0, 0, 1, 1], [], []>} : vector<8x96xf32>, vector<96x96xf32>, vector<8x96xf32> -> vector<8x96xf32>
    %c0_21 = arith.constant 0 : index
    %c0_22 = arith.constant 0 : index
    %24 = vector.load %arg9[%c0_21, %c0_22] : memref<1x96xf32, #tpu.memory_space<vmem>>, vector<1x96xf32>
    %25 = vector.broadcast %24 : vector<1x96xf32> to vector<8x96xf32>
    %26 = arith.addf %23, %25 : vector<8x96xf32>
    %cst_23 = arith.constant 0.000000e+00 : f32
    %27 = vector.broadcast %cst_23 : f32 to vector<8x96xf32>
    %28 = arith.maximumf %26, %27 : vector<8x96xf32>
    %c0_24 = arith.constant 0 : index
    %c0_25 = arith.constant 0 : index
    %29 = vector.load %arg10[%c0_24, %c0_25] : memref<96x8xf32, #tpu.memory_space<vmem>>, vector<96x8xf32>
    %cst_26 = arith.constant dense<0.000000e+00> : vector<8x8xf32>
    %30 = tpu.matmul %28, %29, %cst_26 {dimension_numbers = #tpu.dot_dimension_numbers<[1], [0], [0], [1], [0, 0, 1, 1], [], []>} : vector<8x96xf32>, vector<96x8xf32>, vector<8x8xf32> -> vector<8x8xf32>
    %c0_27 = arith.constant 0 : index
    %c0_28 = arith.constant 0 : index
    %31 = vector.load %arg11[%c0_27, %c0_28] : memref<1x8xf32, #tpu.memory_space<vmem>>, vector<1x8xf32>
    %32 = vector.broadcast %31 : vector<1x8xf32> to vector<8x8xf32>
    %33 = arith.addf %30, %32 : vector<8x8xf32>
    %c0_29 = arith.constant 0 : index
    %c0_30 = arith.constant 0 : index
    %34 = vector.load %arg12[%c0_29, %c0_30] : memref<8x8xf32, #tpu.memory_space<vmem>>, vector<8x8xf32>
    tpu.vector_store %arg12[%c0_29, %c0_30], %33 {strides = array<i32>} : memref<8x8xf32, #tpu.memory_space<vmem>>, vector<8x8xf32>,
    return
  }
  func.func @transform_0(%arg0: i32) -> (i32, i32) {
    %c0_i32 = arith.constant 0 : i32
    %c0_i32_0 = arith.constant 0 : i32
    return %arg0, %c0_i32 : i32, i32
  }
  func.func @transform_1(%arg0: i32) -> (i32, i32) {
    %c0_i32 = arith.constant 0 : i32
    %c0_i32_0 = arith.constant 0 : i32
    %c0_i32_1 = arith.constant 0 : i32
    return %c0_i32, %c0_i32_0 : i32, i32
  }
  func.func @transform_2(%arg0: i32) -> (i32, i32) {
    %c0_i32 = arith.constant 0 : i32
    %c0_i32_0 = arith.constant 0 : i32
    %c0_i32_1 = arith.constant 0 : i32
    return %c0_i32, %c0_i32_0 : i32, i32
  }
  func.func @transform_3(%arg0: i32) -> (i32, i32) {
    %c0_i32 = arith.constant 0 : i32
    %c0_i32_0 = arith.constant 0 : i32
    %c0_i32_1 = arith.constant 0 : i32
    return %c0_i32, %c0_i32_0 : i32, i32
  }
  func.func @transform_4(%arg0: i32) -> (i32, i32) {
    %c0_i32 = arith.constant 0 : i32
    %c0_i32_0 = arith.constant 0 : i32
    %c0_i32_1 = arith.constant 0 : i32
    return %c0_i32, %c0_i32_0 : i32, i32
  }
  func.func @transform_5(%arg0: i32) -> (i32, i32) {
    %c0_i32 = arith.constant 0 : i32
    %c0_i32_0 = arith.constant 0 : i32
    %c0_i32_1 = arith.constant 0 : i32
    return %c0_i32, %c0_i32_0 : i32, i32
  }
  func.func @transform_6(%arg0: i32) -> (i32, i32) {
    %c0_i32 = arith.constant 0 : i32
    %c0_i32_0 = arith.constant 0 : i32
    %c0_i32_1 = arith.constant 0 : i32
    return %c0_i32, %c0_i32_0 : i32, i32
  }
  func.func @transform_7(%arg0: i32) -> (i32, i32) {
    %c0_i32 = arith.constant 0 : i32
    %c0_i32_0 = arith.constant 0 : i32
    %c0_i32_1 = arith.constant 0 : i32
    return %c0_i32, %c0_i32_0 : i32, i32
  }
  func.func @transform_8(%arg0: i32) -> (i32, i32) {
    %c0_i32 = arith.constant 0 : i32
    %c0_i32_0 = arith.constant 0 : i32
    %c0_i32_1 = arith.constant 0 : i32
    return %c0_i32, %c0_i32_0 : i32, i32
  }
  func.func @transform_9(%arg0: i32) -> (i32, i32) {
    %c0_i32 = arith.constant 0 : i32
    %c0_i32_0 = arith.constant 0 : i32
    %c0_i32_1 = arith.constant 0 : i32
    return %c0_i32, %c0_i32_0 : i32, i32
  }
  func.func @transform_10(%arg0: i32) -> (i32, i32) {
    %c0_i32 = arith.constant 0 : i32
    %c0_i32_0 = arith.constant 0 : i32
    %c0_i32_1 = arith.constant 0 : i32
    return %c0_i32, %c0_i32_0 : i32, i32
  }
  func.func @transform_11(%arg0: i32) -> (i32, i32) {
    %c0_i32 = arith.constant 0 : i32
    %c0_i32_0 = arith.constant 0 : i32
    return %arg0, %c0_i32 : i32, i32
  }
}

</mosaic_0001>

<bundles_post_ra>
// kernel: tpu_custom_call.1
= control target key start
LH: loop header
LB: loop body
LE: loop exit
PB: predicated region body
PF: predicated region fallthrough
CT: control target
= control target key end

     0   :  { %16 = vsyncpa [#allocation3], 0  ;;  %s1125_s0 = inlined_call_operand.hbm [shape: f32[8,16], index: 0, kind: input, shape index: {}]   ;;  %s1126_s1 = inlined_call_operand.vmem [shape: f32[16,32], index: 1, kind: input, shape index: {}]   ;;  %s1127_s2 = inlined_call_operand.hbm [shape: f32[1,32], index: 2, kind: input, shape index: {}]   ;;  %s1128_s3 = inlined_call_operand.hbm [shape: f32[32,32], index: 3, kind: input, shape index: {}]   ;;  %s1129_s4 = inlined_call_operand.hbm [shape: f32[1,32], index: 4, kind: input, shape index: {}]   ;;  %s1130_s5 = inlined_call_operand.hbm [shape: f32[32,96], index: 5, kind: input, shape index: {}]   ;;  %s1131_s6 = inlined_call_operand.hbm [shape: f32[1,96], index: 6, kind: input, shape index: {}]   ;;  %s1132_s7 = inlined_call_operand.vmem [shape: f32[96,96], index: 7, kind: input, shape index: {}]   ;;  %s1133_s8 = inlined_call_operand.hbm [shape: f32[1,96], index: 8, kind: input, shape index: {}]   ;;  %s1134_s9 = inlined_call_operand.vmem [shape: f32[96,8], index: 9, kind: input, shape index: {}]   ;;  %s1135_s10 = inlined_call_operand.vmem [shape: f32[1,8], index: 10, kind: input, shape index: {}]   ;;  %s1136_s11 = inlined_call_operand.hbm [shape: f32[8,8], index: 11, kind: output, shape index: {}]  }
   0x1   :  { %17 = vsyncpa [#allocation6], 0 }
   0x2   :  { %18 = vsyncpa [#allocation9], 0 }
   0x3   :  { %19 = vsyncpa [#allocation12], 0 }
   0x4   :  { %20 = vsyncpa [#allocation4], 0  ;;  %s900_s17 = smov [#allocation5]   ;;  %s901_s19 = smov [#allocation8]  }
   0x5   :  { %s39_s18 = sshll.u32 %s900_s17, 4  ;;  %s61_s20 = sshll.u32 %s901_s19, 4  ;;  %s40_s18 = int_to_ptr.vmem [resolvable:$true] %s39_s18  ;;  %s62_s20 = int_to_ptr.vmem [resolvable:$true] %s61_s20 }
   0x6   :  { %s738_s21 = scalar_lea.vmem %s40_s18, 16  ;;  %s742_s22 = scalar_lea.vmem %s40_s18, 32 }
   0x7   :  { %p739_p0 = scmp.ne.s32.totalorder %s40_s18, %s738_s21  ;;  %p743_p1 = scmp.lt.s32.totalorder %s40_s18, %s40_s18 }
   0x8   :  { %p744_p2 = scmp.lt.s32.totalorder %s742_s22, %s738_s21 }
   0xa   :  { %p745_p3 = por %p744_p2, %p743_p1 }
   0xc   :  { %p746_p4 = pnand %p745_p3, %p739_p0 }
   0xe   :  { %749 = shalt.err (!%p746_p4)
}
   0xf   :  { %42 = dma.hbm_to_vmem [thread:$0]  %s1127_s2, 16, %s40_s18, [#allocation6]  }
  0x10   :  { %s758_s25 = scalar_lea.vmem %s62_s20, 16  ;;  %s762_s26 = scalar_lea.vmem %s62_s20, 32 }
  0x11   :  { %p759_p5 = scmp.ne.s32.totalorder %s62_s20, %s758_s25  ;;  %p763_p6 = scmp.lt.s32.totalorder %s62_s20, %s62_s20 }
  0x12   :  { %p764_p7 = scmp.lt.s32.totalorder %s762_s26, %s758_s25 }
  0x14   :  { %p765_p8 = por %p764_p7, %p763_p6 }
  0x16   :  { %p766_p9 = pnand %p765_p8, %p759_p5 }
  0x18   :  { %769 = shalt.err (!%p766_p9)
}
  0x19   :  { %64 = dma.hbm_to_vmem [thread:$0]  %s1129_s4, 16, %s62_s20, [#allocation9]  }
  0x1a   :  { %s902_s29 = smov [#allocation11]   ;;  %s903_s12 = smov [#allocation2]  }
  0x1b   :  { %s83_s30 = sshll.u32 %s902_s29, 4  ;;  %s27_s13 = sshll.u32 %s903_s12, 4  ;;  %s84_s30 = int_to_ptr.vmem [resolvable:$true] %s83_s30  ;;  %s28_s13 = int_to_ptr.vmem [resolvable:$true] %s27_s13 }
  0x1c   :  { %s778_s14 = scalar_lea.vmem %s84_s30, 16  ;;  %s782_s2 = scalar_lea.vmem %s84_s30, 32 }
  0x1d   :  { %p779_p10 = scmp.ne.s32.totalorder %s84_s30, %s778_s14  ;;  %p783_p11 = scmp.lt.s32.totalorder %s84_s30, %s84_s30 }
  0x1e   :  { %p784_p12 = scmp.lt.s32.totalorder %s782_s2, %s778_s14 }
  0x20   :  { %p785_p13 = por %p784_p12, %p783_p11 }
  0x22   :  { %p786_p0 = pnand %p785_p13, %p779_p10 }
  0x24   :  { %789 = shalt.err (!%p786_p0)
}
  0x25   :  { %86 = dma.hbm_to_vmem [thread:$0]  %s1131_s6, 16, %s84_s30, [#allocation12]  }
  0x26   :  { %s798_s17 = scalar_lea.vmem %s28_s13, 128  ;;  %p803_p2 = scmp.lt.s32.totalorder %s28_s13, %s28_s13 }
  0x27   :  { %p799_p1 = scmp.ne.s32.totalorder %s28_s13, %s798_s17  ;;  %p804_p3 = scmp.lt.s32.totalorder %s798_s17, %s798_s17 }
  0x29   :  { %p805_p4 = por %p804_p3, %p803_p2 }
  0x2b   :  { %p806_p5 = pnand %p805_p4, %p799_p1 }
  0x2d   :  { %809 = shalt.err (!%p806_p5)
}
  0x2e   :  { %30 = dma.hbm_to_vmem [thread:$0]  %s1125_s0, 128, %s28_s13, [#allocation3]  }
  0x2f   :  { %s904_s19 = smov [#allocation7]  }
  0x30   :  { %s48_s20 = sshll.u32 %s904_s19, 4  ;;  %s49_s20 = int_to_ptr.vmem [resolvable:$true] %s48_s20 }
  0x31   :  { %s818_s21 = scalar_lea.vmem %s49_s20, 512  ;;  %p823_p7 = scmp.lt.s32.totalorder %s49_s20, %s49_s20 }
  0x32   :  { %p819_p6 = scmp.ne.s32.totalorder %s49_s20, %s818_s21  ;;  %p824_p8 = scmp.lt.s32.totalorder %s818_s21, %s818_s21 }
  0x34   :  { %p825_p9 = por %p824_p8, %p823_p7 }
  0x36   :  { %p826_p10 = pnand %p825_p9, %p819_p6 }
  0x38   :  { %829 = shalt.err (!%p826_p10)
}
  0x39   :  { %s905_s6 = smov 128   ;;  %s906_s22 = smov 8  }
  0x3a   :  { %54 = dma.hbm_to_vmem [thread:$0]  %s1128_s3, 512, %s49_s20, [#allocation6], %s905_s6, %s905_s6, %s906_s22  }
  0x3b   :  { %s907_s25 = smov [#allocation10]   ;;  %s908_s0 = smov [#allocation13]  }
  0x3c   :  { %s70_s26 = sshll.u32 %s907_s25, 4  ;;  %s95_s27 = sshll.u32 %s908_s0, 4  ;;  %s71_s26 = int_to_ptr.vmem [resolvable:$true] %s70_s26  ;;  %s96_s27 = int_to_ptr.vmem [resolvable:$true] %s95_s27 }
  0x3d   :  { %s838_s28 = scalar_lea.vmem %s71_s26, 512  ;;  %p843_p12 = scmp.lt.s32.totalorder %s71_s26, %s71_s26 }
  0x3e   :  { %p839_p11 = scmp.ne.s32.totalorder %s71_s26, %s838_s28  ;;  %p844_p13 = scmp.lt.s32.totalorder %s838_s28, %s838_s28 }
  0x40   :  { %p845_p0 = por %p844_p13, %p843_p12 }
  0x42   :  { %p846_p1 = pnand %p845_p0, %p839_p11 }
  0x44   :  { %849 = shalt.err (!%p846_p1)
}
  0x45   :  { %76 = dma.hbm_to_vmem [thread:$0]  %s1130_s5, 512, %s71_s26, [#allocation9], %s905_s6, %s905_s6, %s906_s22  }
  0x46   :  { %s858_s12 = scalar_lea.vmem %s96_s27, 16  ;;  %s862_s3 = scalar_lea.vmem %s96_s27, 32 }
  0x47   :  { %p859_p2 = scmp.ne.s32.totalorder %s96_s27, %s858_s12  ;;  %p863_p3 = scmp.lt.s32.totalorder %s96_s27, %s96_s27 }
  0x48   :  { %p864_p4 = scmp.lt.s32.totalorder %s862_s3, %s858_s12 }
  0x4a   :  { %p865_p5 = por %p864_p4, %p863_p3 }
  0x4c   :  { %p866_p6 = pnand %p865_p5, %p859_p2 }
  0x4e   :  { %869 = shalt.err (!%p866_p6)
}
  0x4f   :  { %98 = dma.hbm_to_vmem [thread:$0]  %s1133_s8, 16, %s96_s27, [#allocation12]  }
  0x50   :  { %890 = dma.done.wait [#allocation3], 128  }
  0x51   :  { %891 = vsyncadd [#allocation3], 4294967168 }
  0x52   :  { %892 = dma.done.wait [#allocation6], 528  }
  0x53   :  { %893 = vsyncadd [#allocation6], 4294966768 }
  0x54   :  { %894 = dma.done.wait [#allocation9], 528  }
  0x55   :  { %895 = vsyncadd [#allocation9], 4294966768 }
  0x56   :  { %896 = dma.done.wait [#allocation12], 32  }
  0x57   :  { %897 = vsyncadd [#allocation12], 4294967264  ;;  %v909_v0 = vmov 0.0   ;;  %vm910_vm0 = vmmov 0   ;;  %v126_v1 = vld [vmem:[%s1126_s1 + $0x8] sm:$0xff]  ;;  %v125_v2 = vld [vmem:[%s1126_s1] sm:$0xff] }
  0x58   :  { %635 = vmatprep.subr.mxu0 %v909_v0  ;;  %639 = vmatprep.mubr.msk.f32.mxu0 %vm910_vm0, %v909_v0  ;;  %v124_v3 = vld [vmem:[#allocation2] sm:$0xff]  ;;  %vm134_vm1 = vcmask 130048   ;;  %v210_v6 = vld [vmem:[#allocation7 + $0x8] sm:$0xff]  ;;  %v209_v7 = vld [vmem:[#allocation7] sm:$0xff]  ;;  %vm220_vm2 = vcmask 261120   ;;  %vm399_vm3 = vcmask 785408  }
  0x59   :  { %642 = vmatprep.subr.mxu1 %v909_v0  ;;  %650 = vmatprep.mubr.msk.f32.mxu1 %vm910_vm0, %v909_v0  ;;  %v212_v4 = vld [vmem:[#allocation7 + $0x18] sm:$0xff]  ;;  %v211_v5 = vld [vmem:[#allocation7 + $0x10] sm:$0xff]  ;;  %v295_v16 = vld [vmem:[#allocation10] sm:$0xff]  ;;  %s911_s14 = smov [#allocation14]   ;;  %vm566_vm4 = vcmask 64512  }
  0x5a   :  { %636 = vmatpush3.msra.mxu0 %v126_v1  ;;  %643 = vmatpush3.msra.mxu1 %v212_v4  ;;  %v298_v8 = vld [vmem:[#allocation10 + $0x18] sm:$0xff]  ;;  %v297_v14 = vld [vmem:[#allocation10 + $0x10] sm:$0xff]  ;;  %v296_v15 = vld [vmem:[#allocation10 + $0x8] sm:$0xff]  ;;  %s574_s5 = sshll.u32 %s911_s14, 4  ;;  %s575_s5 = int_to_ptr.vmem [resolvable:$true] %s574_s5 }
  0x5b   :  { %637 = vmatprep.subr.mxu0 %v909_v0  ;;  %644 = vmatprep.subr.mxu1 %v909_v0  ;;  %v586_v9 = vld [vmem:[#allocation5] ss:$0 sm:$0xff]  ;;  %v391_v17 = vld [vmem:[%s1132_s7 + $0x58] sm:$0xff]  ;;  %v390_v18 = vld [vmem:[%s1132_s7 + $0x50] sm:$0xff]  ;;  %p875_p8 = scmp.lt.s32.totalorder %s575_s5, %s575_s5 }
  0x5c   :  { %638 = vmatpush3.msra.mxu0 %v125_v2  ;;  %645 = vmatpush3.msra.mxu1 %v211_v5  ;;  %v389_v19 = vld [vmem:[%s1132_s7 + $0x48] sm:$0xff]  ;;  %v388_v20 = vld [vmem:[%s1132_s7 + $0x40] sm:$0xff]  ;;  %v387_v21 = vld [vmem:[%s1132_s7 + $0x38] sm:$0xff] }
  0x5d   :  { %640 = vmatmul.mubr.msk.f32.vlgmr.msra.gmra.mxu0 %vm134_vm1, %v124_v3  ;;  %653 = vmatprep.subr.mxu0 %v909_v0  ;;  %v386_v22 = vld [vmem:[%s1132_s7 + $0x30] sm:$0xff]  ;;  %v385_v23 = vld [vmem:[%s1132_s7 + $0x28] sm:$0xff]  ;;  %v384_v24 = vld [vmem:[%s1132_s7 + $0x20] sm:$0xff] }
  0x5e   :  { %661 = vmatprep.mubr.msk.f32.mxu0 %vm910_vm0, %v909_v0  ;;  %646 = vmatprep.subr.mxu1 %v909_v0  ;;  %v383_v25 = vld [vmem:[%s1132_s7 + $0x18] sm:$0xff]  ;;  %v588_v26 = vld [vmem:[#allocation8] ss:$0 sm:$0xff]  ;;  %v382_v31 = vld [vmem:[%s1132_s7 + $0x10] sm:$0xff] }
  0x5f   :  { %647 = vmatpush3.msra.mxu1 %v210_v6  ;;  %654 = vmatpush3.msra.mxu0 %v298_v8  ;;  %v381_v32 = vld [vmem:[%s1132_s7 + $0x8] sm:$0xff]  ;;  %v380_v33 = vld [vmem:[%s1132_s7] sm:$0xff]  ;;  %v485_v34 = vld [vmem:[%s1134_s9 + $0x58] sm:$0xff] }
  0x60   :  { %648 = vmatprep.subr.mxu1 %v909_v0  ;;  %655 = vmatprep.subr.mxu0 %v909_v0  ;;  %v484_v35 = vld [vmem:[%s1134_s9 + $0x50] sm:$0xff]  ;;  %v483_v36 = vld [vmem:[%s1134_s9 + $0x48] sm:$0xff]  ;;  %v482_v37 = vld [vmem:[%s1134_s9 + $0x40] sm:$0xff] }
  0x61   :  { %649 = vmatpush3.msra.mxu1 %v209_v7  ;;  %656 = vmatpush3.msra.mxu0 %v297_v14  ;;  %v481_v38 = vld [vmem:[%s1134_s9 + $0x38] sm:$0xff]  ;;  %v480_v39 = vld [vmem:[%s1134_s9 + $0x30] sm:$0xff]  ;;  %v479_v40 = vld [vmem:[%s1134_s9 + $0x28] sm:$0xff] }
  0x62   :  { %664 = vmatprep.subr.mxu1 %v909_v0  ;;  %657 = vmatprep.subr.mxu0 %v909_v0  ;;  %v478_v41 = vld [vmem:[%s1134_s9 + $0x20] sm:$0xff]  ;;  %v477_v42 = vld [vmem:[%s1134_s9 + $0x18] sm:$0xff]  ;;  %v590_v43 = vld [vmem:[#allocation11] ss:$0 sm:$0xff] }
  0x63   :  { %658 = vmatpush3.msra.mxu0 %v296_v15  ;;  %v476_v48 = vld [vmem:[%s1134_s9 + $0x10] sm:$0xff]  ;;  %v475_v49 = vld [vmem:[%s1134_s9 + $0x8] sm:$0xff]  ;;  %v474_v50 = vld [vmem:[%s1134_s9] sm:$0xff]  ;;  %s870_s9 = scalar_lea.vmem %s575_s5, 128 }
  0x64   :  { %659 = vmatprep.subr.mxu0 %v909_v0  ;;  %v592_v51 = vld [vmem:[#allocation13] ss:$0 sm:$0xff]  ;;  %v594_v56 = vld [vmem:[%s1135_s10] ss:$0 sm:$0xff]  ;;  %p871_p7 = scmp.ne.s32.totalorder %s575_s5, %s870_s9  ;;  %p876_p9 = scmp.lt.s32.totalorder %s870_s9, %s870_s9 }
  0x65   :  { %660 = vmatpush3.msra.mxu0 %v295_v16 }
  0x66   :  { %691 = vmatprep.subr.mxu0 %v909_v0  ;;  %p877_p10 = por %p876_p9, %p875_p8 }
  0x68   :  { %p878_p11 = pnand %p877_p10, %p871_p7 }
 0x11d   :  { %v204_v10 = vpop.f32.mrf.mxu0 }
 0x11e   :  { %v205_v11 = vadd.f32 %v586_v9, %v204_v10 }
 0x11f   :  { %v641_v12 = vpop.f32.mrf.mxu0 }
 0x120   :  { %v208_v13 = vmax.f32 %v205_v11, 0.0 }
 0x122   :  { %651 = vmatmul.mubr.msk.f32.vlgmr.msra.gmra.mxu1 %vm220_vm2, %v208_v13 }
 0x123   :  { %688 = vmatprep.mubr.msk.f32.mxu1 %vm910_vm0, %v909_v0  ;;  %665 = vmatpush3.msra.mxu1 %v391_v17 }
 0x124   :  { %666 = vmatprep.subr.mxu1 %v909_v0 }
 0x125   :  { %667 = vmatpush3.msra.mxu1 %v390_v18 }
 0x126   :  { %668 = vmatprep.subr.mxu1 %v909_v0 }
 0x127   :  { %669 = vmatpush3.msra.mxu1 %v389_v19 }
 0x128   :  { %670 = vmatprep.subr.mxu1 %v909_v0 }
 0x129   :  { %671 = vmatpush3.msra.mxu1 %v388_v20 }
 0x12a   :  { %672 = vmatprep.subr.mxu1 %v909_v0 }
 0x12b   :  { %673 = vmatpush3.msra.mxu1 %v387_v21 }
 0x12c   :  { %674 = vmatprep.subr.mxu1 %v909_v0 }
 0x12d   :  { %675 = vmatpush3.msra.mxu1 %v386_v22 }
 0x12e   :  { %676 = vmatprep.subr.mxu1 %v909_v0 }
 0x12f   :  { %677 = vmatpush3.msra.mxu1 %v385_v23 }
 0x130   :  { %678 = vmatprep.subr.mxu1 %v909_v0 }
 0x131   :  { %679 = vmatpush3.msra.mxu1 %v384_v24 }
 0x132   :  { %680 = vmatprep.subr.mxu1 %v909_v0 }
 0x133   :  { %681 = vmatpush3.msra.mxu1 %v383_v25 }
 0x134   :  { %682 = vmatprep.subr.mxu1 %v909_v0 }
 0x135   :  { %683 = vmatpush3.msra.mxu1 %v382_v31 }
 0x136   :  { %684 = vmatprep.subr.mxu1 %v909_v0 }
 0x137   :  { %685 = vmatpush3.msra.mxu1 %v381_v32 }
 0x138   :  { %686 = vmatprep.subr.mxu1 %v909_v0 }
 0x139   :  { %687 = vmatpush3.msra.mxu1 %v380_v33 }
 0x1e2   :  { %v290_v27 = vpop.f32.mrf.mxu1 }
 0x1e3   :  { %v291_v28 = vadd.f32 %v588_v26, %v290_v27 }
 0x1e4   :  { %v652_v29 = vpop.f32.mrf.mxu1 }
 0x1e5   :  { %v294_v30 = vmax.f32 %v291_v28, 0.0 }
 0x1e7   :  { %662 = vmatmul.mubr.msk.f32.vlgmr.msra.gmra.mxu0 %vm220_vm2, %v294_v30 }
 0x1e8   :  { %715 = vmatprep.mubr.msk.f32.mxu0 %vm910_vm0, %v909_v0  ;;  %692 = vmatpush3.msra.mxu0 %v485_v34 }
 0x1e9   :  { %693 = vmatprep.subr.mxu0 %v909_v0 }
 0x1ea   :  { %694 = vmatpush3.msra.mxu0 %v484_v35 }
 0x1eb   :  { %695 = vmatprep.subr.mxu0 %v909_v0 }
 0x1ec   :  { %696 = vmatpush3.msra.mxu0 %v483_v36 }
 0x1ed   :  { %697 = vmatprep.subr.mxu0 %v909_v0 }
 0x1ee   :  { %698 = vmatpush3.msra.mxu0 %v482_v37 }
 0x1ef   :  { %699 = vmatprep.subr.mxu0 %v909_v0 }
 0x1f0   :  { %700 = vmatpush3.msra.mxu0 %v481_v38 }
 0x1f1   :  { %701 = vmatprep.subr.mxu0 %v909_v0 }
 0x1f2   :  { %702 = vmatpush3.msra.mxu0 %v480_v39 }
 0x1f3   :  { %703 = vmatprep.subr.mxu0 %v909_v0 }
 0x1f4   :  { %704 = vmatpush3.msra.mxu0 %v479_v40 }
 0x1f5   :  { %705 = vmatprep.subr.mxu0 %v909_v0 }
 0x1f6   :  { %706 = vmatpush3.msra.mxu0 %v478_v41 }
 0x1f7   :  { %707 = vmatprep.subr.mxu0 %v909_v0 }
 0x1f8   :  { %708 = vmatpush3.msra.mxu0 %v477_v42 }
 0x1f9   :  { %709 = vmatprep.subr.mxu0 %v909_v0 }
 0x1fa   :  { %710 = vmatpush3.msra.mxu0 %v476_v48 }
 0x1fb   :  { %711 = vmatprep.subr.mxu0 %v909_v0 }
 0x1fc   :  { %712 = vmatpush3.msra.mxu0 %v475_v49 }
 0x1fd   :  { %713 = vmatprep.subr.mxu0 %v909_v0 }
 0x1fe   :  { %714 = vmatpush3.msra.mxu0 %v474_v50 }
 0x2a7   :  { %v375_v44 = vpop.f32.mrf.mxu0 }
 0x2a8   :  { %v376_v45 = vadd.f32 %v590_v43, %v375_v44 }
 0x2a9   :  { %v663_v46 = vpop.f32.mrf.mxu0 }
 0x2aa   :  { %v379_v47 = vmax.f32 %v376_v45, 0.0 }
 0x2ac   :  { %689 = vmatmul.mubr.msk.f32.vlgmr.msra.gmra.mxu1 %vm399_vm3, %v379_v47 }
 0x36c   :  { %v469_v52 = vpop.f32.mrf.mxu1 }
 0x36d   :  { %v470_v53 = vadd.f32 %v592_v51, %v469_v52 }
 0x36e   :  { %v690_v54 = vpop.f32.mrf.mxu1 }
 0x36f   :  { %v473_v55 = vmax.f32 %v470_v53, 0.0 }
 0x371   :  { %716 = vmatmul.mubr.msk.f32.vlgmr.msra.gmra.mxu0 %vm399_vm3, %v473_v55 }
 0x431   :  { %v562_v57 = vpop.f32.mrf.mxu0 }
 0x432   :  { %v563_v58 = vadd.f32 %v594_v56, %v562_v57 }
 0x433   :  { %v717_v59 = vpop.f32.mrf.mxu0 }
 0x434   :  { %567 = vst.msk [vmem:[#allocation14] sm:$0xff] %vm566_vm4, %v563_v58 }
 0x435   :  { %881 = shalt.err (!%p878_p11)
}
 0x436   :  { %577 = dma.vmem_to_hbm [thread:$0]  %s575_s5, 128, %s1136_s11, [#allocation4]  }
 0x437   :  { %898 = dma.done.wait [#allocation4], 128  }
 0x438   :  { %899 = vsyncadd [#allocation4], 4294967168 }
 0x439   :  { %581 = vsyncpa [#allocation3], 1 }
 0x43a   :  { %582 = vsyncpa [#allocation6], 1 }
 0x43b   :  { %583 = vsyncpa [#allocation9], 1 }
 0x43c   :  { %584 = vsyncpa [#allocation12], 1 }
 0x43d   :  { %585 = vsyncpa [#allocation4], 1 }

</bundles_post_ra>
